<compile_context>
chip_gen: v7x
topology: tpu7x:2x2x1
jax: 0.10.0
libtpu: 0.0.40
codegen_flags: <defaults>
</compile_context>

<pallas_src>
import functools

import jax
import jax.numpy as jnp
from jax.experimental import pallas as pl
from jax.experimental.pallas import tpu as pltpu


def _round_up(x, m):
    return (x + m - 1) // m * m


def _pick_tile(dim_pad, max_tile):
    """Largest multiple of 128 that divides dim_pad and is <= max_tile."""
    t = max(128, (min(max_tile, dim_pad) // 128) * 128)
    while dim_pad % t:
        t -= 128
    return t


def _lora_pair_kernel(x_ref, wu1_ref, v1_ref, wu2_ref, v2_ref, o_ref, acc_ref,
                      *, tn, d_in_pad):
    """One fused LoRA layer pair on a (tm, d_in_pad) row tile.

    Grid axis 0: row tiles   ("parallel").
    Grid axis 1: d_out tiles ("arbitrary"; reduction axis for stage 2).

      stage 1 (per d_out tile j):  h_j = x @ W1^T[:, j] + (x @ U1) @ V1[:, j]
      stage 2 (accumulated):       acc += [h_j @ W2^T[j, :] | h_j @ U2[j, :]]
      finalize (last j):           o   = acc[:, :d_in] + acc[:, d_in:] @ V2
    """
    j = pl.program_id(1)
    w_dtype = wu2_ref.dtype

    @pl.when(j == 0)
    def _():
        acc_ref[...] = jnp.zeros_like(acc_ref)

    x = x_ref[...]
    # Fused base + LoRA-A: one lane-dense MXU pass -> (tm, tn + r_pad).
    t1 = jnp.dot(x, wu1_ref[...], preferred_element_type=jnp.float32)
    base1 = t1[:, :tn]
    xu1 = t1[:, tn:].astype(w_dtype)
    h = (base1 + jnp.dot(xu1, v1_ref[...], preferred_element_type=jnp.float32)
         ).astype(w_dtype)
    # Stage-2 fused base + LoRA-A, accumulated over the d_out tiles.
    acc_ref[...] += jnp.dot(h, wu2_ref[...], preferred_element_type=jnp.float32)

    @pl.when(j == pl.num_programs(1) - 1)
    def _():
        base2 = acc_ref[:, :d_in_pad]
        xu2 = acc_ref[:, d_in_pad:].astype(w_dtype)
        o_ref[...] = (base2 + jnp.dot(xu2, v2_ref[...],
                                      preferred_element_type=jnp.float32)
                      ).astype(o_ref.dtype)


def _prepare_layer(p, *, d_in_pad, d_out_pad, r_pad, tn, dtype):
    """Pad + pre-transpose one layer's weights into MXU-friendly slabs."""
    w1, u1, v1 = p["w1"], p["u1"], p["v1"]   # (d_out,d_in), (d_in,r), (r,d_out)
    w2, u2, v2 = p["w2"], p["u2"], p["v2"]   # (d_in,d_out), (d_out,r), (r,d_in)

    def pad2(a, rows, cols):
        out = jnp.zeros((rows, cols), dtype)
        return out.at[:a.shape[0], :a.shape[1]].set(a.astype(dtype))

    w1t = pad2(w1.T, d_in_pad, d_out_pad)
    u1p = pad2(u1, d_in_pad, r_pad)
    v1p = pad2(v1, r_pad, d_out_pad)
    w2t = pad2(w2.T, d_out_pad, d_in_pad)
    u2p = pad2(u2, d_out_pad, r_pad)
    v2p = pad2(v2, r_pad, d_in_pad)

    # Append U1 to every d_out tile of W1^T so stage 1 is a single MXU pass per
    # tile with a lane-dense output:  [W1^T[:, tile_j] | U1].
    n_tiles = d_out_pad // tn
    wu1 = jnp.concatenate(
        [jnp.concatenate([w1t[:, j * tn:(j + 1) * tn], u1p], axis=1)
         for j in range(n_tiles)], axis=1)
    # Stage 2: [W2^T | U2] -- accumulated across d_out tiles, so U2 appears once.
    wu2 = jnp.concatenate([w2t, u2p], axis=1)
    return dict(wu1=wu1, v1=v1p, wu2=wu2, v2=v2p)


def _lora_layer_pair(y, lw, *, tm, tn, d_in_pad, d_out_pad, r_pad):
    m_pad = y.shape[0]
    n_tiles = d_out_pad // tn
    kernel = functools.partial(_lora_pair_kernel, tn=tn, d_in_pad=d_in_pad)
    return pl.pallas_call(
        kernel,
        out_shape=jax.ShapeDtypeStruct((m_pad, d_in_pad), y.dtype),
        grid_spec=pltpu.PrefetchScalarGridSpec(
            num_scalar_prefetch=0,
            grid=(m_pad // tm, n_tiles),
            in_specs=[
                pl.BlockSpec((tm, d_in_pad), lambda i, j: (i, 0)),          # x rows
                pl.BlockSpec((d_in_pad, tn + r_pad), lambda i, j: (0, j)),  # [W1^T|U1] tile
                pl.BlockSpec((r_pad, tn), lambda i, j: (0, j)),             # V1 tile
                pl.BlockSpec((tn, d_in_pad + r_pad), lambda i, j: (j, 0)),  # [W2^T|U2] tile
                pl.BlockSpec((r_pad, d_in_pad), lambda i, j: (0, 0)),       # V2 (resident)
            ],
            out_specs=pl.BlockSpec((tm, d_in_pad), lambda i, j: (i, 0)),
            scratch_shapes=[pltpu.VMEM((tm, d_in_pad + r_pad), jnp.float32)],
        ),
        compiler_params=pltpu.CompilerParams(
            dimension_semantics=("parallel", "arbitrary"),
            # Above the 16/32 MiB default scoped limits; safe on v7x (64 MiB).
            vmem_limit_bytes=48 * 1024 * 1024,
        ),
    )(y, lw["wu1"], lw["v1"], lw["wu2"], lw["v2"])


@functools.partial(jax.jit, static_argnames=("tm", "tn", "compute_dtype"))
def mlp_lora_forward(x, params, *, tm=256, tn=512, compute_dtype=jnp.bfloat16):
    """x: (B, S, n_in); params: list of per-layer dicts (see init_params)."""
    b, s, d_in = x.shape
    d_out = params[0]["w1"].shape[0]
    r = params[0]["u1"].shape[1]

    d_in_pad = _round_up(d_in, 128)
    d_out_pad = _round_up(d_out, 128)
    r_pad = _round_up(r, 128)
    tn_eff = _pick_tile(d_out_pad, tn)
    m = b * s
    tm_eff = min(tm, _round_up(m, 128))
    m_pad = _round_up(m, tm_eff)

    # Pad rows to the row tile and features to lane multiples; zero padding is
    # exact (no bias), so it never leaks into real outputs.
    y = jnp.zeros((m_pad, d_in_pad), compute_dtype)
    y = y.at[:m, :d_in].set(x.reshape(m, d_in).astype(compute_dtype))

    for p in params:
        # NOTE: for static inference weights, hoist this prep out of the step
        # function (or fold U@V into W entirely and run a plain matmul kernel).
        lw = _prepare_layer(p, d_in_pad=d_in_pad, d_out_pad=d_out_pad,
                            r_pad=r_pad, tn=tn_eff, dtype=compute_dtype)
        y = _lora_layer_pair(y, lw, tm=tm_eff, tn=tn_eff, d_in_pad=d_in_pad,
                             d_out_pad=d_out_pad, r_pad=r_pad)

    return y[:m, :d_in].astype(x.dtype).reshape(b, s, d_in)


def init_params(key, n_layer, n_in, n_out, n_rank, dtype=jnp.float32):
    """Deterministic synthetic init mirroring the PyTorch module's shapes."""
    params = []
    for i in range(n_layer):
        keys = jax.random.split(jax.random.fold_in(key, i), 6)
        params.append(dict(
            # lora1: Linear(n_in -> n_out): W (n_out, n_in), U (n_in, r), V (r, n_out)
            w1=jax.random.normal(keys[0], (n_out, n_in), dtype) * 0.1,
            u1=jax.random.normal(keys[1], (n_in, n_rank), dtype) * 0.1,
            v1=jax.random.normal(keys[2], (n_rank, n_out), dtype) * 0.1,
            # lora2: Linear(n_out -> n_in): W (n_in, n_out), U (n_out, r), V (r, n_in)
            w2=jax.random.normal(keys[3], (n_in, n_out), dtype) * 0.1,
            u2=jax.random.normal(keys[4], (n_out, n_rank), dtype) * 0.1,
            v2=jax.random.normal(keys[5], (n_rank, n_in), dtype) * 0.1,
        ))
    return params


def mlp_lora_reference(x, params):
    """Plain-JAX f32 reference of the same forward pass."""
    b, s, d = x.shape
    y = x.reshape(b * s, d)
    for p in params:
        y = y @ p["w1"].T + (y @ p["u1"]) @ p["v1"]
        y = y @ p["w2"].T + (y @ p["u2"]) @ p["v2"]
    return y.reshape(b, s, d)


if __name__ == "__main__":
    n_batch, n_seq, n_in, n_out, n_rank, n_layer = 2, 8, 32, 64, 4, 2

    key = jax.random.PRNGKey(0)
    kx, kp = jax.random.split(key)
    x = jax.random.normal(kx, (n_batch, n_seq, n_in), jnp.float32)
    params = init_params(kp, n_layer, n_in, n_out, n_rank)

    out = mlp_lora_forward(x, params)
    out = jax.block_until_ready(out)

    ref = mlp_lora_reference(x, params)
    assert out.shape == (n_batch, n_seq, n_in)
    # bf16 MXU operands with f32 accumulation -> loose tolerance vs f32 ref.
    err = jnp.max(jnp.abs(out - ref))
    scale = jnp.max(jnp.abs(ref))
    assert err <= 5e-2 * scale + 1e-3, (float(err), float(scale))

    print("KERNEL_OK")
</pallas_src>

<mosaic_0001>
module attributes {stable_mosaic.version = 11 : i64} {
  func.func @_lora_pair_kernel(%arg0: i32, %arg1: i32, %arg2: memref<128x128xbf16, #tpu.memory_space<vmem>>, %arg3: memref<128x256xbf16, #tpu.memory_space<vmem>>, %arg4: memref<128x128xbf16, #tpu.memory_space<vmem>>, %arg5: memref<128x256xbf16, #tpu.memory_space<vmem>>, %arg6: memref<128x128xbf16, #tpu.memory_space<vmem>>, %arg7: memref<128x128xbf16, #tpu.memory_space<vmem>>, %arg8: memref<128x256xf32, #tpu.memory_space<vmem>>) attributes {dimension_semantics = [#tpu.dimension_semantics<parallel>, #tpu.dimension_semantics<arbitrary>], iteration_bounds = array<i64: 1, 1>, scalar_prefetch = 0 : i64, scratch_operands = 1 : i64, tpu.core_type = #tpu.core_type<tc>, window_params = [{transform_indices = @transform_0, window_bounds = array<i64: 128, 128>}, {transform_indices = @transform_1, window_bounds = array<i64: 128, 256>}, {transform_indices = @transform_2, window_bounds = array<i64: 128, 128>}, {transform_indices = @transform_3, window_bounds = array<i64: 128, 256>}, {pipeline_mode = #tpu.pipeline_mode<synchronous>, transform_indices = @transform_4, window_bounds = array<i64: 128, 128>}, {transform_indices = @transform_5, window_bounds = array<i64: 128, 128>}]} {
    %c0_i32 = arith.constant 0 : i32
    %0 = arith.cmpi eq, %arg1, %c0_i32 : i32
    %1 = arith.extui %0 : i1 to i32
    %c0_i32_0 = arith.constant 0 : i32
    %2 = arith.cmpi ne, %1, %c0_i32_0 : i32
    scf.if %2 {
      %cst_16 = arith.constant 0.000000e+00 : f32
      %21 = vector.broadcast %cst_16 : f32 to vector<128x256xf32>
      %c0_17 = arith.constant 0 : index
      %c0_18 = arith.constant 0 : index
      %22 = vector.load %arg8[%c0_17, %c0_18] : memref<128x256xf32, #tpu.memory_space<vmem>>, vector<128x256xf32>
      tpu.vector_store %arg8[%c0_17, %c0_18], %21 {strides = array<i32>} : memref<128x256xf32, #tpu.memory_space<vmem>>, vector<128x256xf32>,
    } else {
    }
    %c0 = arith.constant 0 : index
    %c0_1 = arith.constant 0 : index
    %3 = vector.load %arg2[%c0, %c0_1] : memref<128x128xbf16, #tpu.memory_space<vmem>>, vector<128x128xbf16>
    %c0_2 = arith.constant 0 : index
    %c0_3 = arith.constant 0 : index
    %4 = vector.load %arg3[%c0_2, %c0_3] : memref<128x256xbf16, #tpu.memory_space<vmem>>, vector<128x256xbf16>
    %cst = arith.constant dense<0.000000e+00> : vector<128x256xf32>
    %5 = tpu.matmul %3, %4, %cst {dimension_numbers = #tpu.dot_dimension_numbers<[1], [0], [0], [1], [0, 0, 1, 1], [], []>} : vector<128x128xbf16>, vector<128x256xbf16>, vector<128x256xf32> -> vector<128x256xf32>
    %6 = vector.extract_strided_slice %5 {offsets = [0, 0], sizes = [128, 128], strides = [1, 1]} : vector<128x256xf32> to vector<128x128xf32>
    %7 = vector.extract_strided_slice %5 {offsets = [0, 128], sizes = [128, 128], strides = [1, 1]} : vector<128x256xf32> to vector<128x128xf32>
    %8 = arith.truncf %7 : vector<128x128xf32> to vector<128x128xbf16>
    %c0_4 = arith.constant 0 : index
    %c0_5 = arith.constant 0 : index
    %9 = vector.load %arg4[%c0_4, %c0_5] : memref<128x128xbf16, #tpu.memory_space<vmem>>, vector<128x128xbf16>
    %cst_6 = arith.constant dense<0.000000e+00> : vector<128x128xf32>
    %10 = tpu.matmul %8, %9, %cst_6 {dimension_numbers = #tpu.dot_dimension_numbers<[1], [0], [0], [1], [0, 0, 1, 1], [], []>} : vector<128x128xbf16>, vector<128x128xbf16>, vector<128x128xf32> -> vector<128x128xf32>
    %11 = arith.addf %6, %10 : vector<128x128xf32>
    %12 = arith.truncf %11 : vector<128x128xf32> to vector<128x128xbf16>
    %c0_7 = arith.constant 0 : index
    %c0_8 = arith.constant 0 : index
    %13 = vector.load %arg8[%c0_7, %c0_8] : memref<128x256xf32, #tpu.memory_space<vmem>>, vector<128x256xf32>
    %c0_9 = arith.constant 0 : index
    %c0_10 = arith.constant 0 : index
    %14 = vector.load %arg5[%c0_9, %c0_10] : memref<128x256xbf16, #tpu.memory_space<vmem>>, vector<128x256xbf16>
    %cst_11 = arith.constant dense<0.000000e+00> : vector<128x256xf32>
    %15 = tpu.matmul %12, %14, %cst_11 {dimension_numbers = #tpu.dot_dimension_numbers<[1], [0], [0], [1], [0, 0, 1, 1], [], []>} : vector<128x128xbf16>, vector<128x256xbf16>, vector<128x256xf32> -> vector<128x256xf32>
    %16 = arith.addf %13, %15 : vector<128x256xf32>
    %c0_12 = arith.constant 0 : index
    %c0_13 = arith.constant 0 : index
    %17 = vector.load %arg8[%c0_12, %c0_13] : memref<128x256xf32, #tpu.memory_space<vmem>>, vector<128x256xf32>
    tpu.vector_store %arg8[%c0_12, %c0_13], %16 {strides = array<i32>} : memref<128x256xf32, #tpu.memory_space<vmem>>, vector<128x256xf32>,
    %c0_i32_14 = arith.constant 0 : i32
    %18 = arith.cmpi eq, %arg1, %c0_i32_14 : i32
    %19 = arith.extui %18 : i1 to i32
    %c0_i32_15 = arith.constant 0 : i32
    %20 = arith.cmpi ne, %19, %c0_i32_15 : i32
    scf.if %20 {
      %c0_16 = arith.constant 0 : index
      %c0_17 = arith.constant 0 : index
      %21 = vector.load %arg8[%c0_16, %c0_17] : memref<128x256xf32, #tpu.memory_space<vmem>>, vector<128x128xf32>
      %c0_18 = arith.constant 0 : index
      %c128 = arith.constant 128 : index
      %22 = vector.load %arg8[%c0_18, %c128] : memref<128x256xf32, #tpu.memory_space<vmem>>, vector<128x128xf32>
      %23 = arith.truncf %22 : vector<128x128xf32> to vector<128x128xbf16>
      %c0_19 = arith.constant 0 : index
      %c0_20 = arith.constant 0 : index
      %24 = vector.load %arg6[%c0_19, %c0_20] : memref<128x128xbf16, #tpu.memory_space<vmem>>, vector<128x128xbf16>
      %cst_21 = arith.constant dense<0.000000e+00> : vector<128x128xf32>
      %25 = tpu.matmul %23, %24, %cst_21 {dimension_numbers = #tpu.dot_dimension_numbers<[1], [0], [0], [1], [0, 0, 1, 1], [], []>} : vector<128x128xbf16>, vector<128x128xbf16>, vector<128x128xf32> -> vector<128x128xf32>
      %26 = arith.addf %21, %25 : vector<128x128xf32>
      %27 = arith.truncf %26 : vector<128x128xf32> to vector<128x128xbf16>
      %c0_22 = arith.constant 0 : index
      %c0_23 = arith.constant 0 : index
      %28 = vector.load %arg7[%c0_22, %c0_23] : memref<128x128xbf16, #tpu.memory_space<vmem>>, vector<128x128xbf16>
      tpu.vector_store %arg7[%c0_22, %c0_23], %27 {strides = array<i32>} : memref<128x128xbf16, #tpu.memory_space<vmem>>, vector<128x128xbf16>,
    } else {
    }
    return
  }
  func.func @transform_0(%arg0: i32, %arg1: i32) -> (i32, i32) {
    %c0_i32 = arith.constant 0 : i32
    %c0_i32_0 = arith.constant 0 : i32
    return %arg0, %c0_i32 : i32, i32
  }
  func.func @transform_1(%arg0: i32, %arg1: i32) -> (i32, i32) {
    %c0_i32 = arith.constant 0 : i32
    %c0_i32_0 = arith.constant 0 : i32
    return %c0_i32, %arg1 : i32, i32
  }
  func.func @transform_2(%arg0: i32, %arg1: i32) -> (i32, i32) {
    %c0_i32 = arith.constant 0 : i32
    %c0_i32_0 = arith.constant 0 : i32
    return %c0_i32, %arg1 : i32, i32
  }
  func.func @transform_3(%arg0: i32, %arg1: i32) -> (i32, i32) {
    %c0_i32 = arith.constant 0 : i32
    %c0_i32_0 = arith.constant 0 : i32
    return %arg1, %c0_i32 : i32, i32
  }
  func.func @transform_4(%arg0: i32, %arg1: i32) -> (i32, i32) {
    %c0_i32 = arith.constant 0 : i32
    %c0_i32_0 = arith.constant 0 : i32
    %c0_i32_1 = arith.constant 0 : i32
    return %c0_i32, %c0_i32_0 : i32, i32
  }
  func.func @transform_5(%arg0: i32, %arg1: i32) -> (i32, i32) {
    %c0_i32 = arith.constant 0 : i32
    %c0_i32_0 = arith.constant 0 : i32
    return %arg0, %c0_i32 : i32, i32
  }
}

</mosaic_0001>

<bundles_post_ra>
// kernel: mlp_lora_forward.2
= control target key start
LH: loop header
LB: loop body
LE: loop exit
PB: predicated region body
PF: predicated region fallthrough
CT: control target
= control target key end

     0   :  { %v1436_v1 = vmov 0   ;;  %s1723_s1 = inlined_call_operand.vmem [shape: bf16[128,256], index: 1, kind: input, shape index: {}]   ;;  %s1724_s0 = inlined_call_operand.vmem [shape: bf16[128,128], index: 0, kind: input, shape index: {}]   ;;  %s1725_s2 = inlined_call_operand.vmem [shape: bf16[128,128], index: 2, kind: input, shape index: {}]   ;;  %s1726_s3 = inlined_call_operand.vmem [shape: bf16[128,256], index: 3, kind: input, shape index: {}]   ;;  %s1727_s4 = inlined_call_operand.vmem [shape: bf16[128,128], index: 4, kind: input, shape index: {}]   ;;  %s1728_s5 = inlined_call_operand.vmem [shape: bf16[128,128], index: 5, kind: output, shape index: {}]  }
   0x1   :  { %v1364_v0 = vld [vmem:[%s1723_s1 + $0x4] ss:$8 sps:$4 sm:$0xff]   ;;  %249 = vmatprep.mubr.bf16.mxu0 %v1436_v1  ;;  %v1366_v2 = vld [vmem:[%s1723_s1] ss:$8 sps:$4 sm:$0xff]   ;;  %v1367_v3 = vld [vmem:[%s1723_s1 + $0x14] ss:$8 sps:$4 sm:$0xff]  }
   0x2   :  { %217 = vmatprep.subr.bf16.mxu0 %v1364_v0  ;;  %v1369_v4 = vld [vmem:[%s1723_s1 + $0x10] ss:$8 sps:$4 sm:$0xff]   ;;  %v1370_v5 = vld [vmem:[%s1723_s1 + $0x24] ss:$8 sps:$4 sm:$0xff]   ;;  %v1372_v6 = vld [vmem:[%s1723_s1 + $0x20] ss:$8 sps:$4 sm:$0xff]  }
   0x3   :  { %218 = vmatpush1.bf16.msra.mxu0 %v1366_v2  ;;  %v1373_v7 = vld [vmem:[%s1723_s1 + $0x34] ss:$8 sps:$4 sm:$0xff]   ;;  %v1375_v8 = vld [vmem:[%s1723_s1 + $0x30] ss:$8 sps:$4 sm:$0xff]   ;;  %v1376_v9 = vld [vmem:[%s1723_s1 + $0x44] ss:$8 sps:$4 sm:$0xff]  }
   0x4   :  { %219 = vmatprep.subr.bf16.mxu0 %v1367_v3  ;;  %v1378_v10 = vld [vmem:[%s1723_s1 + $0x40] ss:$8 sps:$4 sm:$0xff]   ;;  %v1379_v11 = vld [vmem:[%s1723_s1 + $0x54] ss:$8 sps:$4 sm:$0xff]   ;;  %v1381_v12 = vld [vmem:[%s1723_s1 + $0x50] ss:$8 sps:$4 sm:$0xff]  }
   0x5   :  { %v1382_v13 = vld [vmem:[%s1723_s1 + $0x64] ss:$8 sps:$4 sm:$0xff]   ;;  %v1384_v16 = vld [vmem:[%s1723_s1 + $0x60] ss:$8 sps:$4 sm:$0xff]   ;;  %v1385_v17 = vld [vmem:[%s1723_s1 + $0x74] ss:$8 sps:$4 sm:$0xff]  }
   0x6   :  { %v1396_v14 = vld [vmem:[%s1725_s2] sm:$0xff]   ;;  %v1397_v15 = vld [vmem:[%s1725_s2 + $0x8] sm:$0xff]   ;;  %v1398_v18 = vld [vmem:[%s1725_s2 + $0x10] sm:$0xff]  }
   0x7   :  { %220 = vmatpush1.bf16.msra.mxu0 %v1369_v4  ;;  %1299 = vmatprep.subr.bf16.mxu1 %v1396_v14  ;;  %v1387_v19 = vld [vmem:[%s1723_s1 + $0x70] ss:$8 sps:$4 sm:$0xff]   ;;  %v1388_v21 = vld [vmem:[%s1724_s0] sm:$0xff]   ;;  %v1389_v23 = vld [vmem:[%s1724_s0 + $0x8] sm:$0xff]  }
   0x8   :  { %221 = vmatprep.subr.bf16.mxu0 %v1370_v5  ;;  %1300 = vmatpush3.bf16.msra.mxu1 %v1396_v14  ;;  %v1399_v20 = vld [vmem:[%s1725_s2 + $0x18] sm:$0xff]   ;;  %v1400_v22 = vld [vmem:[%s1725_s2 + $0x20] sm:$0xff]   ;;  %v1390_v24 = vld [vmem:[%s1724_s0 + $0x10] sm:$0xff]  }
   0x9   :  { %1301 = vmatprep.subr.bf16.mxu1 %v1397_v15  ;;  %v1391_v25 = vld [vmem:[%s1724_s0 + $0x18] sm:$0xff]   ;;  %v1392_v26 = vld [vmem:[%s1724_s0 + $0x20] sm:$0xff]   ;;  %v1393_v27 = vld [vmem:[%s1724_s0 + $0x28] sm:$0xff]  }
   0xa   :  { %v1394_v28 = vld [vmem:[%s1724_s0 + $0x30] sm:$0xff]   ;;  %v1395_v29 = vld [vmem:[%s1724_s0 + $0x38] sm:$0xff]   ;;  %v1401_v30 = vld [vmem:[%s1725_s2 + $0x28] sm:$0xff]  }
   0xb   :  { %222 = vmatpush1.bf16.msra.mxu0 %v1372_v6  ;;  %v1402_v31 = vld [vmem:[%s1725_s2 + $0x30] sm:$0xff]   ;;  %v1403_v32 = vld [vmem:[%s1725_s2 + $0x38] sm:$0xff]   ;;  %v1406_v33 = vld [vmem:[%s1726_s3 + $0x4] ss:$8 sps:$4 sm:$0xff]  }
   0xc   :  { %223 = vmatprep.subr.bf16.mxu0 %v1373_v7  ;;  %1302 = vmatpush3.bf16.msra.mxu1 %v1397_v15  ;;  %v1404_v43 = vld [vmem:[%s1726_s3] ss:$8 sps:$4 sm:$0xff]   ;;  %v1409_v45 = vld [vmem:[%s1726_s3 + $0x14] ss:$8 sps:$4 sm:$0xff]   ;;  %v1407_v46 = vld [vmem:[%s1726_s3 + $0x10] ss:$8 sps:$4 sm:$0xff]  }
   0xd   :  { %1303 = vmatprep.subr.bf16.mxu1 %v1398_v18  ;;  %v1412_v48 = vld [vmem:[%s1726_s3 + $0x24] ss:$8 sps:$4 sm:$0xff]   ;;  %v1410_v52 = vld [vmem:[%s1726_s3 + $0x20] ss:$8 sps:$4 sm:$0xff]   ;;  %v1415_v54 = vld [vmem:[%s1726_s3 + $0x34] ss:$8 sps:$4 sm:$0xff]  }
   0xe   :  { %v1413_v55 = vld [vmem:[%s1726_s3 + $0x30] ss:$8 sps:$4 sm:$0xff]   ;;  %v1418_v57 = vld [vmem:[%s1726_s3 + $0x44] ss:$8 sps:$4 sm:$0xff]   ;;  %v1416_v61 = vld [vmem:[%s1726_s3 + $0x40] ss:$8 sps:$4 sm:$0xff]  }
   0xf   :  { %224 = vmatpush1.bf16.msra.mxu0 %v1375_v8  ;;  %v1421_v63 = vld [vmem:[%s1726_s3 + $0x54] ss:$8 sps:$4 sm:$0xff]   ;;  %v1419_v0 = vld [vmem:[%s1726_s3 + $0x50] ss:$8 sps:$4 sm:$0xff]   ;;  %v1424_v3 = vld [vmem:[%s1726_s3 + $0x64] ss:$8 sps:$4 sm:$0xff]  }
  0x10   :  { %225 = vmatprep.subr.bf16.mxu0 %v1376_v9  ;;  %1304 = vmatpush3.bf16.msra.mxu1 %v1398_v18  ;;  %v1422_v7 = vld [vmem:[%s1726_s3 + $0x60] ss:$8 sps:$4 sm:$0xff]  }
  0x11   :  { %1305 = vmatprep.subr.bf16.mxu1 %v1399_v20 }
  0x13   :  { %226 = vmatpush1.bf16.msra.mxu0 %v1378_v10 }
  0x14   :  { %227 = vmatprep.subr.bf16.mxu0 %v1379_v11  ;;  %1306 = vmatpush3.bf16.msra.mxu1 %v1399_v20 }
  0x15   :  { %1307 = vmatprep.subr.bf16.mxu1 %v1400_v22 }
  0x17   :  { %228 = vmatpush1.bf16.msra.mxu0 %v1381_v12 }
  0x18   :  { %229 = vmatprep.subr.bf16.mxu0 %v1382_v13  ;;  %1308 = vmatpush3.bf16.msra.mxu1 %v1400_v22 }
  0x19   :  { %1309 = vmatprep.subr.bf16.mxu1 %v1401_v30 }
  0x1b   :  { %230 = vmatpush1.bf16.msra.mxu0 %v1384_v16 }
  0x1c   :  { %231 = vmatprep.subr.bf16.mxu0 %v1385_v17  ;;  %1310 = vmatpush3.bf16.msra.mxu1 %v1401_v30  ;;  %v1432_v30 = vld [vmem:[%s1727_s4 + $0x20] sm:$0xff]  }
  0x1d   :  { %1311 = vmatprep.subr.bf16.mxu1 %v1402_v31 }
  0x1f   :  { %232 = vmatpush1.bf16.msra.mxu0 %v1387_v19 }
  0x20   :  { %1312 = vmatpush3.bf16.msra.mxu1 %v1402_v31 }
  0x21   :  { %1313 = vmatprep.subr.bf16.mxu1 %v1403_v32 }
  0x22   :  { %250 = vmatmul.mubr.bf16.vlgmr.msra.gmra.mrb[0].mxu0 %v1388_v21 }
  0x23   :  { %259 = vmatprep.mubr.bf16.mxu0 %v1436_v1 }
  0x24   :  { %1314 = vmatpush3.bf16.msra.mxu1 %v1403_v32 }
  0x25   :  { %651 = vmatprep.subr.bf16.mxu1 %v1406_v33 }
  0x2a   :  { %260 = vmatmul.mubr.bf16.gmra.mrb[4].mxu0 %v1389_v23 }
  0x2b   :  { %269 = vmatprep.mubr.bf16.mxu0 %v1436_v1 }
  0x32   :  { %270 = vmatmul.mubr.bf16.gmra.mrb[8].mxu0 %v1390_v24  ;;  %v1427_v24 = vld [vmem:[%s1726_s3 + $0x74] ss:$8 sps:$4 sm:$0xff]  }
  0x33   :  { %279 = vmatprep.mubr.bf16.mxu0 %v1436_v1 }
  0x3a   :  { %280 = vmatmul.mubr.bf16.gmra.mrb[12].mxu0 %v1391_v25  ;;  %v1425_v25 = vld [vmem:[%s1726_s3 + $0x70] ss:$8 sps:$4 sm:$0xff]  }
  0x3b   :  { %289 = vmatprep.mubr.bf16.mxu0 %v1436_v1 }
  0x42   :  { %290 = vmatmul.mubr.bf16.gmra.mrb[16].mxu0 %v1392_v26  ;;  %v1428_v26 = vld [vmem:[%s1727_s4] sm:$0xff]  }
  0x43   :  { %299 = vmatprep.mubr.bf16.mxu0 %v1436_v1  ;;  %1331 = vmatprep.subr.bf16.mxu0 %v1428_v26 }
  0x44   :  { %1332 = vmatpush3.bf16.msra.mxu0 %v1428_v26 }
  0x4a   :  { %300 = vmatmul.mubr.bf16.gmra.mrb[20].mxu0 %v1393_v27  ;;  %v1429_v27 = vld [vmem:[%s1727_s4 + $0x8] sm:$0xff]  }
  0x4b   :  { %309 = vmatprep.mubr.bf16.mxu0 %v1436_v1  ;;  %1333 = vmatprep.subr.bf16.mxu0 %v1429_v27 }
  0x4c   :  { %1334 = vmatpush3.bf16.msra.mxu0 %v1429_v27 }
  0x52   :  { %310 = vmatmul.mubr.bf16.gmra.mrb[24].mxu0 %v1394_v28  ;;  %v1430_v28 = vld [vmem:[%s1727_s4 + $0x10] sm:$0xff]  }
  0x53   :  { %319 = vmatprep.mubr.bf16.mxu0 %v1436_v1  ;;  %1335 = vmatprep.subr.bf16.mxu0 %v1430_v28 }
  0x54   :  { %1336 = vmatpush3.bf16.msra.mxu0 %v1430_v28 }
  0x5a   :  { %320 = vmatmul.mubr.bf16.gmra.mrb[28].mxu0 %v1395_v29  ;;  %v1431_v29 = vld [vmem:[%s1727_s4 + $0x18] sm:$0xff]  }
  0x5b   :  { %1337 = vmatprep.subr.bf16.mxu0 %v1431_v29 }
  0x5c   :  { %1338 = vmatpush3.bf16.msra.mxu0 %v1431_v29 }
  0x5d   :  { %1339 = vmatprep.subr.bf16.mxu0 %v1432_v30 }
  0x60   :  { %1340 = vmatpush3.bf16.msra.mxu0 %v1432_v30 }
  0xf5   :  { %v1574_v34 = vpop.f32.mrb[0].mxu0 }
  0xf6   :  { %v253_v35 = vpop.f32.mrb[1].mxu0 }
  0xf7   :  { %v1576_v36 = vpop.f32.mrb[2].mxu0 }
  0xf8   :  { %v257_v37 = vpop.f32.mrb[3].mxu0 }
  0xf9   :  { %v330_v38 = vpack.c.bf16 %v257_v37, %v253_v35 }
  0xfb   :  { %1315 = vmatprep.mubr.bf16.mxu1 %v330_v38 }
  0xfd   :  { %v1578_v39 = vpop.f32.mrb[4].mxu0 }
  0xfe   :  { %v263_v40 = vpop.f32.mrb[5].mxu0 }
  0xff   :  { %v1580_v41 = vpop.f32.mrb[6].mxu0 }
 0x100   :  { %v267_v42 = vpop.f32.mrb[7].mxu0 }
 0x101   :  { %v331_v44 = vpack.c.bf16 %v267_v42, %v263_v40 }
 0x103   :  { %1316 = vmatmul.mubr.bf16.vlgmr.msra.gmra.mrb[0].mxu1 %v331_v44 }
 0x104   :  { %652 = vmatpush1.bf16.msra.mxu1 %v1404_v43 }
 0x105   :  { %v1591_v47 = vpop.f32.mrb[8].mxu0  ;;  %653 = vmatprep.subr.bf16.mxu1 %v1409_v45 }
 0x106   :  { %v273_v49 = vpop.f32.mrb[9].mxu0 }
 0x107   :  { %v1596_v50 = vpop.f32.mrb[10].mxu0 }
 0x108   :  { %v277_v51 = vpop.f32.mrb[11].mxu0  ;;  %654 = vmatpush1.bf16.msra.mxu1 %v1407_v46 }
 0x109   :  { %v332_v53 = vpack.c.bf16 %v277_v51, %v273_v49  ;;  %655 = vmatprep.subr.bf16.mxu1 %v1412_v48 }
 0x10b   :  { %1319 = vmatprep.mubr.bf16.mxu1 %v332_v53 }
 0x10c   :  { %656 = vmatpush1.bf16.msra.mxu1 %v1410_v52 }
 0x10d   :  { %v1607_v56 = vpop.f32.mrb[12].mxu0  ;;  %657 = vmatprep.subr.bf16.mxu1 %v1415_v54 }
 0x10e   :  { %v283_v58 = vpop.f32.mrb[13].mxu0 }
 0x10f   :  { %v1612_v59 = vpop.f32.mrb[14].mxu0 }
 0x110   :  { %v287_v60 = vpop.f32.mrb[15].mxu0  ;;  %658 = vmatpush1.bf16.msra.mxu1 %v1413_v55 }
 0x111   :  { %v333_v62 = vpack.c.bf16 %v287_v60, %v283_v58  ;;  %659 = vmatprep.subr.bf16.mxu1 %v1418_v57 }
 0x113   :  { %1320 = vmatmul.mubr.bf16.gmra.mrb[4].mxu1 %v333_v62 }
 0x114   :  { %660 = vmatpush1.bf16.msra.mxu1 %v1416_v61 }
 0x115   :  { %v1623_v2 = vpop.f32.mrb[16].mxu0  ;;  %661 = vmatprep.subr.bf16.mxu1 %v1421_v63 }
 0x116   :  { %v293_v4 = vpop.f32.mrb[17].mxu0 }
 0x117   :  { %v1628_v5 = vpop.f32.mrb[18].mxu0 }
 0x118   :  { %v297_v6 = vpop.f32.mrb[19].mxu0  ;;  %662 = vmatpush1.bf16.msra.mxu1 %v1419_v0 }
 0x119   :  { %v334_v8 = vpack.c.bf16 %v297_v6, %v293_v4  ;;  %663 = vmatprep.subr.bf16.mxu1 %v1424_v3 }
 0x11b   :  { %1323 = vmatprep.mubr.bf16.mxu1 %v334_v8  ;;  %v1433_v8 = vld [vmem:[%s1727_s4 + $0x28] sm:$0xff]  }
 0x11c   :  { %664 = vmatpush1.bf16.msra.mxu1 %v1422_v7  ;;  %1341 = vmatprep.subr.bf16.mxu0 %v1433_v8 }
 0x11d   :  { %v1633_v9 = vpop.f32.mrb[20].mxu0  ;;  %665 = vmatprep.subr.bf16.mxu1 %v1427_v24  ;;  %1342 = vmatpush3.bf16.msra.mxu0 %v1433_v8 }
 0x11e   :  { %v303_v10 = vpop.f32.mrb[21].mxu0 }
 0x11f   :  { %v1635_v11 = vpop.f32.mrb[22].mxu0 }
 0x120   :  { %v307_v12 = vpop.f32.mrb[23].mxu0  ;;  %666 = vmatpush1.bf16.msra.mxu1 %v1425_v25 }
 0x121   :  { %v335_v13 = vpack.c.bf16 %v307_v12, %v303_v10  ;;  %v1435_v10 = vld [vmem:[%s1727_s4 + $0x38] sm:$0xff]  }
 0x123   :  { %1324 = vmatmul.mubr.bf16.gmra.mrb[8].mxu1 %v335_v13 }
 0x125   :  { %v1637_v14 = vpop.f32.mrb[24].mxu0 }
 0x126   :  { %v313_v15 = vpop.f32.mrb[25].mxu0 }
 0x127   :  { %v1639_v16 = vpop.f32.mrb[26].mxu0 }
 0x128   :  { %v317_v17 = vpop.f32.mrb[27].mxu0 }
 0x129   :  { %v336_v18 = vpack.c.bf16 %v317_v17, %v313_v15 }
 0x12b   :  { %1327 = vmatprep.mubr.bf16.mxu1 %v336_v18 }
 0x12d   :  { %v1641_v19 = vpop.f32.mrb[28].mxu0 }
 0x12e   :  { %v323_v20 = vpop.f32.mrb[29].mxu0 }
 0x12f   :  { %v1643_v21 = vpop.f32.mrb[30].mxu0 }
 0x130   :  { %v327_v22 = vpop.f32.mrb[31].mxu0 }
 0x131   :  { %v337_v23 = vpack.c.bf16 %v327_v22, %v323_v20 }
 0x133   :  { %1328 = vmatmul.mubr.bf16.gmra.mrb[12].mxu1 %v337_v23 }
 0x134   :  { %683 = vmatprep.mubr.bf16.mxu1 %v1436_v1 }
 0x1d6   :  { %v1317_v31 = vpop.f32.mrb[0].mxu1 }
 0x1d7   :  { %v501_v32 = vadd.f32 %v1317_v31, %v1578_v39  ;;  %v436_v33 = vpop.f32.mrb[1].mxu1 }
 0x1d8   :  { %v499_v35 = vadd.f32 %v436_v33, %v1574_v34  ;;  %v1318_v37 = vpop.f32.mrb[2].mxu1 }
 0x1d9   :  { %v502_v38 = vadd.f32 %v1318_v37, %v1580_v41  ;;  %v439_v40 = vpop.f32.mrb[3].mxu1 }
 0x1da   :  { %v500_v42 = vadd.f32 %v439_v40, %v1576_v36 }
 0x1db   :  { %v516_v43 = vpack.c.bf16 %v502_v38, %v501_v32 }
 0x1dc   :  { %v515_v44 = vpack.c.bf16 %v500_v42, %v499_v35 }
 0x1de   :  { %684 = vmatmul.mubr.bf16.vlgmr.msra.gmra.mrb[16].mxu1 %v515_v44 }
 0x1df   :  { %693 = vmatprep.mubr.bf16.mxu1 %v1436_v1 }
 0x1e6   :  { %v1321_v45 = vpop.f32.mrb[4].mxu1  ;;  %694 = vmatmul.mubr.bf16.gmra.mrb[20].mxu1 %v516_v43 }
 0x1e7   :  { %v505_v46 = vadd.f32 %v1321_v45, %v1607_v56  ;;  %v452_v48 = vpop.f32.mrb[5].mxu1  ;;  %703 = vmatprep.mubr.bf16.mxu1 %v1436_v1 }
 0x1e8   :  { %v503_v34 = vadd.f32 %v452_v48, %v1591_v47  ;;  %v1322_v39 = vpop.f32.mrb[6].mxu1 }
 0x1e9   :  { %v506_v41 = vadd.f32 %v1322_v39, %v1612_v59  ;;  %v455_v49 = vpop.f32.mrb[7].mxu1 }
 0x1ea   :  { %v504_v36 = vadd.f32 %v455_v49, %v1596_v50 }
 0x1eb   :  { %v518_v51 = vpack.c.bf16 %v506_v41, %v505_v46 }
 0x1ec   :  { %v517_v52 = vpack.c.bf16 %v504_v36, %v503_v34 }
 0x1ee   :  { %704 = vmatmul.mubr.bf16.gmra.mrb[24].mxu1 %v517_v52 }
 0x1ef   :  { %713 = vmatprep.mubr.bf16.mxu1 %v1436_v1 }
 0x1f6   :  { %v1325_v53 = vpop.f32.mrb[8].mxu1  ;;  %714 = vmatmul.mubr.bf16.gmra.mrb[28].mxu1 %v518_v51 }
 0x1f7   :  { %v509_v54 = vadd.f32 %v1325_v53, %v1633_v9  ;;  %v468_v55 = vpop.f32.mrb[9].mxu1  ;;  %723 = vmatprep.mubr.bf16.mxu1 %v1436_v1  ;;  %v1434_v9 = vld [vmem:[%s1727_s4 + $0x30] sm:$0xff]  }
 0x1f8   :  { %v507_v47 = vadd.f32 %v468_v55, %v1623_v2  ;;  %v1326_v56 = vpop.f32.mrb[10].mxu1  ;;  %1343 = vmatprep.subr.bf16.mxu0 %v1434_v9 }
 0x1f9   :  { %v510_v57 = vadd.f32 %v1326_v56, %v1635_v11  ;;  %v471_v58 = vpop.f32.mrb[11].mxu1  ;;  %1344 = vmatpush3.bf16.msra.mxu0 %v1434_v9 }
 0x1fa   :  { %v508_v50 = vadd.f32 %v471_v58, %v1628_v5  ;;  %1345 = vmatprep.subr.bf16.mxu0 %v1435_v10 }
 0x1fb   :  { %v520_v59 = vpack.c.bf16 %v510_v57, %v509_v54 }
 0x1fc   :  { %v519_v60 = vpack.c.bf16 %v508_v50, %v507_v47 }
 0x1fd   :  { %1346 = vmatpush3.bf16.msra.mxu0 %v1435_v10 }
 0x1fe   :  { %724 = vmatmul.mubr.bf16.gmra.mrb[32].mxu1 %v519_v60 }
 0x1ff   :  { %733 = vmatprep.mubr.bf16.mxu1 %v1436_v1 }
 0x206   :  { %v1329_v61 = vpop.f32.mrb[12].mxu1  ;;  %734 = vmatmul.mubr.bf16.gmra.mrb[36].mxu1 %v520_v59 }
 0x207   :  { %v513_v62 = vadd.f32 %v1329_v61, %v1641_v19  ;;  %v484_v63 = vpop.f32.mrb[13].mxu1  ;;  %743 = vmatprep.mubr.bf16.mxu1 %v1436_v1 }
 0x208   :  { %v511_v0 = vadd.f32 %v484_v63, %v1637_v14  ;;  %v1330_v2 = vpop.f32.mrb[14].mxu1 }
 0x209   :  { %v514_v3 = vadd.f32 %v1330_v2, %v1643_v21  ;;  %v487_v4 = vpop.f32.mrb[15].mxu1 }
 0x20a   :  { %v512_v5 = vadd.f32 %v487_v4, %v1639_v16 }
 0x20b   :  { %v522_v6 = vpack.c.bf16 %v514_v3, %v513_v62 }
 0x20c   :  { %v521_v7 = vpack.c.bf16 %v512_v5, %v511_v0 }
 0x20e   :  { %744 = vmatmul.mubr.bf16.gmra.mrb[40].mxu1 %v521_v7 }
 0x20f   :  { %753 = vmatprep.mubr.bf16.mxu1 %v1436_v1 }
 0x216   :  { %754 = vmatmul.mubr.bf16.gmra.mrb[44].mxu1 %v522_v6 }
 0x2b1   :  { %v685_v1 = vpop.f32.mrb[16].mxu1 }
 0x2b2   :  { %v687_v11 = vpop.f32.mrb[17].mxu1 }
 0x2b3   :  { %v689_v12 = vpop.f32.mrb[18].mxu1 }
 0x2b4   :  { %v691_v13 = vpop.f32.mrb[19].mxu1 }
 0x2b5   :  { %v863_v14 = vpack.c.bf16 %v691_v13, %v687_v11 }
 0x2b7   :  { %1347 = vmatprep.mubr.bf16.mxu0 %v863_v14 }
 0x2b9   :  { %v695_v15 = vpop.f32.mrb[20].mxu1 }
 0x2ba   :  { %v697_v16 = vpop.f32.mrb[21].mxu1 }
 0x2bb   :  { %v699_v17 = vpop.f32.mrb[22].mxu1 }
 0x2bc   :  { %v701_v18 = vpop.f32.mrb[23].mxu1 }
 0x2bd   :  { %v864_v19 = vpack.c.bf16 %v701_v18, %v697_v16 }
 0x2bf   :  { %1348 = vmatmul.mubr.bf16.vlgmr.msra.gmra.mrb[32].mxu0 %v864_v19 }
 0x2c1   :  { %v705_v20 = vpop.f32.mrb[24].mxu1 }
 0x2c2   :  { %v707_v21 = vpop.f32.mrb[25].mxu1 }
 0x2c3   :  { %v709_v22 = vpop.f32.mrb[26].mxu1 }
 0x2c4   :  { %v711_v23 = vpop.f32.mrb[27].mxu1 }
 0x2c5   :  { %v865_v24 = vpack.c.bf16 %v711_v23, %v707_v21 }
 0x2c7   :  { %1351 = vmatprep.mubr.bf16.mxu0 %v865_v24 }
 0x2c9   :  { %v715_v25 = vpop.f32.mrb[28].mxu1 }
 0x2ca   :  { %v717_v26 = vpop.f32.mrb[29].mxu1 }
 0x2cb   :  { %v719_v27 = vpop.f32.mrb[30].mxu1 }
 0x2cc   :  { %v721_v28 = vpop.f32.mrb[31].mxu1 }
 0x2cd   :  { %v866_v29 = vpack.c.bf16 %v721_v28, %v717_v26 }
 0x2cf   :  { %1352 = vmatmul.mubr.bf16.gmra.mrb[36].mxu0 %v866_v29 }
 0x2d1   :  { %v725_v30 = vpop.f32.mrb[32].mxu1 }
 0x2d2   :  { %v727_v31 = vpop.f32.mrb[33].mxu1 }
 0x2d3   :  { %v729_v32 = vpop.f32.mrb[34].mxu1 }
 0x2d4   :  { %v731_v33 = vpop.f32.mrb[35].mxu1 }
 0x2d5   :  { %v867_v35 = vpack.c.bf16 %v731_v33, %v727_v31 }
 0x2d7   :  { %1355 = vmatprep.mubr.bf16.mxu0 %v867_v35 }
 0x2d9   :  { %v735_v37 = vpop.f32.mrb[36].mxu1 }
 0x2da   :  { %v737_v38 = vpop.f32.mrb[37].mxu1 }
 0x2db   :  { %v739_v40 = vpop.f32.mrb[38].mxu1 }
 0x2dc   :  { %v741_v42 = vpop.f32.mrb[39].mxu1 }
 0x2dd   :  { %v868_v43 = vpack.c.bf16 %v741_v42, %v737_v38 }
 0x2df   :  { %1356 = vmatmul.mubr.bf16.gmra.mrb[40].mxu0 %v868_v43 }
 0x2e1   :  { %v745_v44 = vpop.f32.mrb[40].mxu1 }
 0x2e2   :  { %v747_v45 = vpop.f32.mrb[41].mxu1 }
 0x2e3   :  { %v749_v46 = vpop.f32.mrb[42].mxu1 }
 0x2e4   :  { %v751_v48 = vpop.f32.mrb[43].mxu1 }
 0x2e5   :  { %v869_v34 = vpack.c.bf16 %v751_v48, %v747_v45 }
 0x2e7   :  { %1359 = vmatprep.mubr.bf16.mxu0 %v869_v34 }
 0x2e9   :  { %v755_v39 = vpop.f32.mrb[44].mxu1 }
 0x2ea   :  { %v757_v41 = vpop.f32.mrb[45].mxu1 }
 0x2eb   :  { %v759_v49 = vpop.f32.mrb[46].mxu1 }
 0x2ec   :  { %v761_v36 = vpop.f32.mrb[47].mxu1 }
 0x2ed   :  { %v870_v51 = vpack.c.bf16 %v761_v36, %v757_v41 }
 0x2ef   :  { %1360 = vmatmul.mubr.bf16.gmra.mrb[44].mxu0 %v870_v51 }
 0x392   :  { %v1349_v52 = vpop.f32.mrb[32].mxu0 }
 0x393   :  { %v1034_v53 = vadd.f32 %v1349_v52, %v695_v15  ;;  %v969_v54 = vpop.f32.mrb[33].mxu0 }
 0x394   :  { %v1032_v55 = vadd.f32 %v969_v54, %v685_v1  ;;  %v1350_v47 = vpop.f32.mrb[34].mxu0 }
 0x395   :  { %v1035_v56 = vadd.f32 %v1350_v47, %v699_v17  ;;  %v972_v57 = vpop.f32.mrb[35].mxu0 }
 0x396   :  { %v1033_v58 = vadd.f32 %v972_v57, %v689_v12 }
 0x397   :  { %v1228_v50 = vpack.c.bf16 %v1035_v56, %v1034_v53 }
 0x398   :  { %v1223_v59 = vpack.c.bf16 %v1033_v58, %v1032_v55 }
 0x399   :  { %1260 = vst [vmem:[%s1728_s5 + $0x8] sm:$0xff] %v1228_v50  }
 0x39a   :  { %1224 = vst [vmem:[%s1728_s5] sm:$0xff] %v1223_v59  }
 0x3a2   :  { %v1353_v60 = vpop.f32.mrb[36].mxu0 }
 0x3a3   :  { %v1038_v61 = vadd.f32 %v1353_v60, %v715_v25  ;;  %v985_v62 = vpop.f32.mrb[37].mxu0 }
 0x3a4   :  { %v1036_v63 = vadd.f32 %v985_v62, %v705_v20  ;;  %v1354_v0 = vpop.f32.mrb[38].mxu0 }
 0x3a5   :  { %v1039_v2 = vadd.f32 %v1354_v0, %v719_v27  ;;  %v988_v3 = vpop.f32.mrb[39].mxu0 }
 0x3a6   :  { %v1037_v4 = vadd.f32 %v988_v3, %v709_v22 }
 0x3a7   :  { %v1238_v5 = vpack.c.bf16 %v1039_v2, %v1038_v61 }
 0x3a8   :  { %v1233_v6 = vpack.c.bf16 %v1037_v4, %v1036_v63 }
 0x3a9   :  { %1262 = vst [vmem:[%s1728_s5 + $0x18] sm:$0xff] %v1238_v5  }
 0x3aa   :  { %1261 = vst [vmem:[%s1728_s5 + $0x10] sm:$0xff] %v1233_v6  }
 0x3b2   :  { %v1357_v7 = vpop.f32.mrb[40].mxu0 }
 0x3b3   :  { %v1042_v8 = vadd.f32 %v1357_v7, %v735_v37  ;;  %v1001_v9 = vpop.f32.mrb[41].mxu0 }
 0x3b4   :  { %v1040_v10 = vadd.f32 %v1001_v9, %v725_v30  ;;  %v1358_v1 = vpop.f32.mrb[42].mxu0 }
 0x3b5   :  { %v1043_v11 = vadd.f32 %v1358_v1, %v739_v40  ;;  %v1004_v12 = vpop.f32.mrb[43].mxu0 }
 0x3b6   :  { %v1041_v13 = vadd.f32 %v1004_v12, %v729_v32 }
 0x3b7   :  { %v1248_v14 = vpack.c.bf16 %v1043_v11, %v1042_v8 }
 0x3b8   :  { %v1243_v15 = vpack.c.bf16 %v1041_v13, %v1040_v10 }
 0x3b9   :  { %1264 = vst [vmem:[%s1728_s5 + $0x28] sm:$0xff] %v1248_v14  }
 0x3ba   :  { %1263 = vst [vmem:[%s1728_s5 + $0x20] sm:$0xff] %v1243_v15  }
 0x3c2   :  { %v1361_v16 = vpop.f32.mrb[44].mxu0 }
 0x3c3   :  { %v1046_v17 = vadd.f32 %v1361_v16, %v755_v39  ;;  %v1017_v18 = vpop.f32.mrb[45].mxu0 }
 0x3c4   :  { %v1044_v19 = vadd.f32 %v1017_v18, %v745_v44  ;;  %v1362_v20 = vpop.f32.mrb[46].mxu0 }
 0x3c5   :  { %v1047_v21 = vadd.f32 %v1362_v20, %v759_v49  ;;  %v1020_v22 = vpop.f32.mrb[47].mxu0 }
 0x3c6   :  { %v1045_v23 = vadd.f32 %v1020_v22, %v749_v46 }
 0x3c7   :  { %v1258_v24 = vpack.c.bf16 %v1047_v21, %v1046_v17 }
 0x3c8   :  { %v1253_v25 = vpack.c.bf16 %v1045_v23, %v1044_v19 }
 0x3c9   :  { %1266 = vst [vmem:[%s1728_s5 + $0x38] sm:$0xff] %v1258_v24  }
 0x3ca   :  { %1265 = vst [vmem:[%s1728_s5 + $0x30] sm:$0xff] %v1253_v25  }

</bundles_post_ra>
